<compile_context>
chip_gen: v7x
topology: tpu7x:2x2x1
jax: 0.10.0
libtpu: 0.0.40
codegen_flags: <defaults>
</compile_context>

<pallas_src>
import jax
import jax.numpy as jnp
from jax import lax
from jax.experimental import pallas as pl
from jax.experimental.pallas import tpu as pltpu


_SINGLE_STEP_Z_BYTES = 16 << 20   # collapse to one grid step below this z size


def _round_up(x, m):
    return (x + m - 1) // m * m


def _leaky_relu(x, slope=0.01):
    return jnp.where(x > 0, x, slope * x)


def _layer_norm(x, gamma, beta, eps=1e-5):
    mu = jnp.mean(x, axis=-1, keepdims=True)
    var = jnp.mean((x - mu) * (x - mu), axis=-1, keepdims=True)
    return (x - mu) * lax.rsqrt(var + eps) * gamma + beta


def predictor_kernel(bi_ref, z_ref,
                     w1_ref, b1_ref, g1_ref, be1_ref,
                     w2_ref, b2_ref, g2_ref, be2_ref,
                     w3_ref, b3_ref,
                     out_ref, acc_sum_ref, acc_cnt_ref):
    """Grid: (num_n_tiles,).  acc_sum: (G_pad, 2H) f32 segment sums;
    acc_cnt: (G_pad, 128) f32 segment counts (same count in every lane)."""
    step = pl.program_id(0)
    g_pad = acc_sum_ref.shape[0]
    tile_n = z_ref.shape[0]

    @pl.when(step == 0)
    def _():
        acc_sum_ref[...] = jnp.zeros_like(acc_sum_ref)
        acc_cnt_ref[...] = jnp.zeros_like(acc_cnt_ref)

    # ---- pooled-sum / count accumulation for this N tile ----
    bi = bi_ref[...]                                               # (1, tile_n) int32
    graph_ids = lax.broadcasted_iota(jnp.int32, (g_pad, tile_n), 0)
    onehot = (graph_ids == bi).astype(jnp.float32)                 # (g_pad, tile_n)
    # Segment sums: one MXU matmul per tile.
    acc_sum_ref[...] += jnp.dot(onehot, z_ref[...].astype(jnp.float32),
                                preferred_element_type=jnp.float32)
    # Segment counts: XLU lane reduce (different VLIW slot -> overlaps the MXU).
    acc_cnt_ref[...] += jnp.sum(onehot, axis=1, keepdims=True)

    # ---- classifier MLP epilogue: runs once, on the last N tile ----
    @pl.when(step == pl.num_programs(0) - 1)
    def _():
        sums = acc_sum_ref[...]                                    # (g_pad, 2H) add-pool
        counts = acc_cnt_ref[:, :1]                                # (g_pad, 1)
        inv_counts = pl.reciprocal(jnp.maximum(counts, 1.0), approx=False)
        means = sums * inv_counts                                  # mean-pool
        h = jnp.concatenate([means, sums], axis=-1)                # (g_pad, 4H)

        h = jnp.dot(h, w1_ref[...], preferred_element_type=jnp.float32) + b1_ref[...]
        h = _leaky_relu(_layer_norm(h, g1_ref[...], be1_ref[...]))
        # Dropout(p=0.4): identity in eval mode.

        h = jnp.dot(h, w2_ref[...], preferred_element_type=jnp.float32) + b2_ref[...]
        h = _leaky_relu(_layer_norm(h, g2_ref[...], be2_ref[...]))
        # Dropout(p=0.4): identity in eval mode.

        # Final Linear(2H -> 1) as VPU multiply + lane reduce.
        logits = jnp.sum(h * w3_ref[...], axis=-1, keepdims=True) + b3_ref[...]
        # Lane-dense (unmasked) store; wrapper slices column 0 back out.
        out_ref[...] = jnp.broadcast_to(logits, out_ref.shape).astype(out_ref.dtype)


def _choose_tile_n(n_nodes, feat, tile_n):
    padded_min = _round_up(max(n_nodes, 1), 128)
    if tile_n is None:
        # Single grid step if the whole padded z fits comfortably in VMEM on
        # every generation (v7x has only 64 MiB) -> zero per-step overhead.
        if padded_min * feat * 4 <= _SINGLE_STEP_Z_BYTES:
            return padded_min
        tile_n = 2048          # large streaming tile: amortizes step overhead
    tile_n = max(128, _round_up(tile_n, 128))
    return min(tile_n, padded_min)


def _vmem_cap_bytes():
    # Generation-aware cap: ~75% of physical VMEM when queryable; otherwise a
    # 48 MiB cap that is safe on v7x (64 MiB) and conservative on v5e/v6e (128 MiB).
    try:
        return int(pltpu.get_tpu_info().vmem_capacity_bytes * 3 // 4)
    except Exception:
        return 48 << 20


def predictor_forward(z, batch_index, params, num_graphs, *, tile_n=None):
    """z: (N, 2H) float32, batch_index: (N,) int in [0, num_graphs)."""
    n_nodes, feat = z.shape
    g_pad = _round_up(max(num_graphs, 1), 8)       # sublane-aligned graph rows

    tile_n = _choose_tile_n(n_nodes, feat, tile_n)
    padded_n = _round_up(n_nodes, tile_n)
    num_tiles = padded_n // tile_n
    pad = padded_n - n_nodes

    z_p = jnp.pad(z.astype(jnp.float32), ((0, pad), (0, 0)))
    # Padded nodes get an out-of-range graph id -> match no one-hot row.
    bi_p = jnp.pad(batch_index.astype(jnp.int32), (0, pad),
                   constant_values=g_pad).reshape(1, padded_n)

    def const_spec(shape):
        # Constant index_map -> the block never changes across grid steps;
        # single-buffer it so resident weights use half the VMEM.
        kwargs = {}
        if hasattr(pl, "Buffered"):
            kwargs["pipeline_mode"] = pl.Buffered(1)
        return pl.BlockSpec(shape, lambda i: (0, 0), **kwargs)

    weight_names = ("w1", "b1", "g1", "be1", "w2", "b2", "g2", "be2", "w3", "b3")
    weights = [params[k] for k in weight_names]

    grid_spec = pltpu.PrefetchScalarGridSpec(
        num_scalar_prefetch=0,
        grid=(num_tiles,),
        in_specs=[
            pl.BlockSpec((1, tile_n), lambda i: (0, i)),        # batch_index tile
            pl.BlockSpec((tile_n, feat), lambda i: (i, 0)),     # z tile
        ] + [const_spec(w.shape) for w in weights],
        out_specs=pl.BlockSpec((g_pad, 128), lambda i: (0, 0)),
        scratch_shapes=[
            pltpu.VMEM((g_pad, feat), jnp.float32),             # segment sums
            pltpu.VMEM((g_pad, 128), jnp.float32),              # segment counts
        ],
    )

    # VMEM budget from the actual allocations, plus headroom.
    weight_bytes = sum(int(w.size) * w.dtype.itemsize for w in weights)
    est_bytes = (
        2 * (tile_n * feat + tile_n) * 4        # double-buffered z + batch_index tiles
        + weight_bytes                          # single-buffered resident weights
        + g_pad * (feat + 2 * 128) * 4          # accumulators + lane-dense output
        + g_pad * tile_n * 4                    # one-hot staging
        + (4 << 20)                             # matmul staging / compiler headroom
    )
    vmem_limit = int(min(max(est_bytes, 8 << 20), _vmem_cap_bytes()))

    out_padded = pl.pallas_call(
        predictor_kernel,
        out_shape=jax.ShapeDtypeStruct((g_pad, 128), jnp.float32),
        grid_spec=grid_spec,
        compiler_params=pltpu.CompilerParams(
            # Sequential accumulation over N tiles.
            # TODO(synk): on v7x, split the pooling stream over both TensorCores
            # (per-core partial sums + tiny cross-core combine).
            dimension_semantics=("arbitrary",),
            vmem_limit_bytes=vmem_limit,
        ),
    )(bi_p, z_p, *weights)

    return out_padded[:num_graphs, :1]                              # (G, 1)


def init_params(key, hidden_dim):
    H2 = hidden_dim * 2
    H4 = hidden_dim * 4
    ks = jax.random.split(key, 6)
    scale = 0.1
    return {
        # Linear(4H -> 2H), stored (in, out)
        "w1": scale * jax.random.normal(ks[0], (H4, H2), jnp.float32),
        "b1": scale * jax.random.normal(ks[1], (1, H2), jnp.float32),
        # LayerNorm(2H)
        "g1": jnp.ones((1, H2), jnp.float32),
        "be1": jnp.zeros((1, H2), jnp.float32),
        # Linear(2H -> 2H)
        "w2": scale * jax.random.normal(ks[2], (H2, H2), jnp.float32),
        "b2": scale * jax.random.normal(ks[3], (1, H2), jnp.float32),
        # LayerNorm(2H)
        "g2": jnp.ones((1, H2), jnp.float32),
        "be2": jnp.zeros((1, H2), jnp.float32),
        # Linear(2H -> 1): weight stored as a (1, 2H) row (PyTorch layout).
        "w3": scale * jax.random.normal(ks[4], (1, H2), jnp.float32),
        "b3": scale * jax.random.normal(ks[5], (1, 1), jnp.float32),
    }


def reference_forward(z, batch_index, params, num_graphs):
    """Pure-JAX reference (eval mode)."""
    onehot = (jnp.arange(num_graphs)[:, None] == batch_index[None, :]).astype(jnp.float32)
    sums = onehot @ z
    counts = jnp.maximum(onehot.sum(axis=1, keepdims=True), 1.0)
    h = jnp.concatenate([sums / counts, sums], axis=1)

    def ln(x, g, b, eps=1e-5):
        mu = x.mean(-1, keepdims=True)
        var = ((x - mu) ** 2).mean(-1, keepdims=True)
        return (x - mu) / jnp.sqrt(var + eps) * g + b

    h = ln(h @ params["w1"] + params["b1"], params["g1"], params["be1"])
    h = jnp.where(h > 0, h, 0.01 * h)
    h = ln(h @ params["w2"] + params["b2"], params["g2"], params["be2"])
    h = jnp.where(h > 0, h, 0.01 * h)
    return h @ params["w3"].T + params["b3"]


if __name__ == "__main__":
    hidden_dim = 16          # node feature dim 2H = 32, classifier in = 4H = 64
    num_nodes = 1000         # padded to 1024
    num_graphs = 8

    key = jax.random.PRNGKey(0)
    kz, kb, kp = jax.random.split(key, 3)

    z = jax.random.normal(kz, (num_nodes, 2 * hidden_dim), jnp.float32)
    batch_index = jnp.sort(
        jax.random.randint(kb, (num_nodes,), 0, num_graphs, dtype=jnp.int32))
    params = init_params(kp, hidden_dim)

    ref = reference_forward(z, batch_index, params, num_graphs)

    # Auto tile: padded z (1024 x 32 f32 = 128 KiB) fits in VMEM -> one grid step.
    out = jax.block_until_ready(
        predictor_forward(z, batch_index, params, num_graphs))
    assert out.shape == (num_graphs, 1)
    assert jnp.allclose(out, ref, atol=1e-4, rtol=1e-4), (out, ref)

    # Explicit small tile exercises the multi-step accumulation path.
    out_tiled = jax.block_until_ready(
        predictor_forward(z, batch_index, params, num_graphs, tile_n=256))
    assert jnp.allclose(out_tiled, ref, atol=1e-4, rtol=1e-4), (out_tiled, ref)

    print("KERNEL_OK")
</pallas_src>

<mosaic_0001>
module attributes {stable_mosaic.version = 11 : i64} {
  func.func @predictor_kernel(%arg0: i32, %arg1: memref<1x1024xi32, #tpu.memory_space<vmem>>, %arg2: memref<1024x32xf32, #tpu.memory_space<vmem>>, %arg3: memref<64x32xf32, #tpu.memory_space<vmem>>, %arg4: memref<1x32xf32, #tpu.memory_space<vmem>>, %arg5: memref<1x32xf32, #tpu.memory_space<vmem>>, %arg6: memref<1x32xf32, #tpu.memory_space<vmem>>, %arg7: memref<32x32xf32, #tpu.memory_space<vmem>>, %arg8: memref<1x32xf32, #tpu.memory_space<vmem>>, %arg9: memref<1x32xf32, #tpu.memory_space<vmem>>, %arg10: memref<1x32xf32, #tpu.memory_space<vmem>>, %arg11: memref<1x32xf32, #tpu.memory_space<vmem>>, %arg12: memref<1x1xf32, #tpu.memory_space<vmem>>, %arg13: memref<8x128xf32, #tpu.memory_space<vmem>>, %arg14: memref<8x32xf32, #tpu.memory_space<vmem>>, %arg15: memref<8x128xf32, #tpu.memory_space<vmem>>) attributes {dimension_semantics = [#tpu.dimension_semantics<arbitrary>], iteration_bounds = array<i64: 1>, scalar_prefetch = 0 : i64, scratch_operands = 2 : i64, tpu.core_type = #tpu.core_type<tc>, window_params = [{transform_indices = @transform_0, window_bounds = array<i64: 1, 1024>}, {transform_indices = @transform_1, window_bounds = array<i64: 1024, 32>}, {pipeline_mode = #tpu.pipeline_mode<synchronous>, transform_indices = @transform_2, window_bounds = array<i64: 64, 32>}, {pipeline_mode = #tpu.pipeline_mode<synchronous>, transform_indices = @transform_3, window_bounds = array<i64: 1, 32>}, {pipeline_mode = #tpu.pipeline_mode<synchronous>, transform_indices = @transform_4, window_bounds = array<i64: 1, 32>}, {pipeline_mode = #tpu.pipeline_mode<synchronous>, transform_indices = @transform_5, window_bounds = array<i64: 1, 32>}, {pipeline_mode = #tpu.pipeline_mode<synchronous>, transform_indices = @transform_6, window_bounds = array<i64: 32, 32>}, {pipeline_mode = #tpu.pipeline_mode<synchronous>, transform_indices = @transform_7, window_bounds = array<i64: 1, 32>}, {pipeline_mode = #tpu.pipeline_mode<synchronous>, transform_indices = @transform_8, window_bounds = array<i64: 1, 32>}, {pipeline_mode = #tpu.pipeline_mode<synchronous>, transform_indices = @transform_9, window_bounds = array<i64: 1, 32>}, {pipeline_mode = #tpu.pipeline_mode<synchronous>, transform_indices = @transform_10, window_bounds = array<i64: 1, 32>}, {pipeline_mode = #tpu.pipeline_mode<synchronous>, transform_indices = @transform_11, window_bounds = array<i64: 1, 1>}, {pipeline_mode = #tpu.pipeline_mode<synchronous>, transform_indices = @transform_12, window_bounds = array<i64: 8, 128>}]} {
    %c0_i32 = arith.constant 0 : i32
    %0 = arith.cmpi eq, %arg0, %c0_i32 : i32
    %1 = arith.extui %0 : i1 to i32
    %c0_i32_0 = arith.constant 0 : i32
    %2 = arith.cmpi ne, %1, %c0_i32_0 : i32
    scf.if %2 {
      %cst_15 = arith.constant 0.000000e+00 : f32
      %23 = vector.broadcast %cst_15 : f32 to vector<8x32xf32>
      %c0_16 = arith.constant 0 : index
      %c0_17 = arith.constant 0 : index
      %24 = vector.load %arg14[%c0_16, %c0_17] : memref<8x32xf32, #tpu.memory_space<vmem>>, vector<8x32xf32>
      tpu.vector_store %arg14[%c0_16, %c0_17], %23 {strides = array<i32>} : memref<8x32xf32, #tpu.memory_space<vmem>>, vector<8x32xf32>,
      %cst_18 = arith.constant 0.000000e+00 : f32
      %25 = vector.broadcast %cst_18 : f32 to vector<8x128xf32>
      %c0_19 = arith.constant 0 : index
      %c0_20 = arith.constant 0 : index
      %26 = vector.load %arg15[%c0_19, %c0_20] : memref<8x128xf32, #tpu.memory_space<vmem>>, vector<8x128xf32>
      tpu.vector_store %arg15[%c0_19, %c0_20], %25 {strides = array<i32>} : memref<8x128xf32, #tpu.memory_space<vmem>>, vector<8x128xf32>,
    } else {
    }
    %c0 = arith.constant 0 : index
    %c0_1 = arith.constant 0 : index
    %3 = vector.load %arg1[%c0, %c0_1] : memref<1x1024xi32, #tpu.memory_space<vmem>>, vector<1x1024xi32>
    %4 = tpu.iota {dimensions = array<i32: 0>} : vector<8x1024xi32>
    %5 = vector.broadcast %3 : vector<1x1024xi32> to vector<8x1024xi32>
    %6 = arith.cmpi eq, %4, %5 : vector<8x1024xi32>
    %7 = arith.extui %6 : vector<8x1024xi1> to vector<8x1024xi32>
    %8 = arith.sitofp %7 : vector<8x1024xi32> to vector<8x1024xf32>
    %c0_2 = arith.constant 0 : index
    %c0_3 = arith.constant 0 : index
    %9 = vector.load %arg14[%c0_2, %c0_3] : memref<8x32xf32, #tpu.memory_space<vmem>>, vector<8x32xf32>
    %c0_4 = arith.constant 0 : index
    %c0_5 = arith.constant 0 : index
    %10 = vector.load %arg2[%c0_4, %c0_5] : memref<1024x32xf32, #tpu.memory_space<vmem>>, vector<1024x32xf32>
    %cst = arith.constant dense<0.000000e+00> : vector<8x32xf32>
    %11 = tpu.matmul %8, %10, %cst {dimension_numbers = #tpu.dot_dimension_numbers<[1], [0], [0], [1], [0, 0, 1, 1], [], []>} : vector<8x1024xf32>, vector<1024x32xf32>, vector<8x32xf32> -> vector<8x32xf32>
    %12 = arith.addf %9, %11 : vector<8x32xf32>
    %c0_6 = arith.constant 0 : index
    %c0_7 = arith.constant 0 : index
    %13 = vector.load %arg14[%c0_6, %c0_7] : memref<8x32xf32, #tpu.memory_space<vmem>>, vector<8x32xf32>
    tpu.vector_store %arg14[%c0_6, %c0_7], %12 {strides = array<i32>} : memref<8x32xf32, #tpu.memory_space<vmem>>, vector<8x32xf32>,
    %c0_8 = arith.constant 0 : index
    %c0_9 = arith.constant 0 : index
    %14 = vector.load %arg15[%c0_8, %c0_9] : memref<8x128xf32, #tpu.memory_space<vmem>>, vector<8x128xf32>
    %cst_10 = arith.constant dense<0.000000e+00> : vector<8xf32>
    %15 = vector.multi_reduction <add>, %8, %cst_10 [1] : vector<8x1024xf32> to vector<8xf32>
    %16 = vector.shape_cast %15 : vector<8xf32> to vector<8x1xf32>
    %17 = vector.broadcast %16 : vector<8x1xf32> to vector<8x128xf32>
    %18 = arith.addf %14, %17 : vector<8x128xf32>
    %c0_11 = arith.constant 0 : index
    %c0_12 = arith.constant 0 : index
    %19 = vector.load %arg15[%c0_11, %c0_12] : memref<8x128xf32, #tpu.memory_space<vmem>>, vector<8x128xf32>
    tpu.vector_store %arg15[%c0_11, %c0_12], %18 {strides = array<i32>} : memref<8x128xf32, #tpu.memory_space<vmem>>, vector<8x128xf32>,
    %c0_i32_13 = arith.constant 0 : i32
    %20 = arith.cmpi eq, %arg0, %c0_i32_13 : i32
    %21 = arith.extui %20 : i1 to i32
    %c0_i32_14 = arith.constant 0 : i32
    %22 = arith.cmpi ne, %21, %c0_i32_14 : i32
    scf.if %22 {
      %c0_15 = arith.constant 0 : index
      %c0_16 = arith.constant 0 : index
      %23 = vector.load %arg14[%c0_15, %c0_16] : memref<8x32xf32, #tpu.memory_space<vmem>>, vector<8x32xf32>
      %c0_17 = arith.constant 0 : index
      %c0_18 = arith.constant 0 : index
      %24 = vector.load %arg15[%c0_17, %c0_18] : memref<8x128xf32, #tpu.memory_space<vmem>>, vector<8x1xf32>
      %cst_19 = arith.constant 1.000000e+00 : f32
      %25 = vector.broadcast %cst_19 : f32 to vector<8x1xf32>
      %26 = arith.maximumf %24, %25 : vector<8x1xf32>
      %27 = tpu.reciprocal %26 : vector<8x1xf32> -> vector<8x1xf32>
      %28 = vector.broadcast %27 : vector<8x1xf32> to vector<8x32xf32>
      %29 = arith.mulf %23, %28 : vector<8x32xf32>
      %30 = tpu.concatenate %29, %23 in 1 : vector<8x32xf32>, vector<8x32xf32> -> vector<8x64xf32>
      %c0_20 = arith.constant 0 : index
      %c0_21 = arith.constant 0 : index
      %31 = vector.load %arg3[%c0_20, %c0_21] : memref<64x32xf32, #tpu.memory_space<vmem>>, vector<64x32xf32>
      %cst_22 = arith.constant dense<0.000000e+00> : vector<8x32xf32>
      %32 = tpu.matmul %30, %31, %cst_22 {dimension_numbers = #tpu.dot_dimension_numbers<[1], [0], [0], [1], [0, 0, 1, 1], [], []>} : vector<8x64xf32>, vector<64x32xf32>, vector<8x32xf32> -> vector<8x32xf32>
      %c0_23 = arith.constant 0 : index
      %c0_24 = arith.constant 0 : index
      %33 = vector.load %arg4[%c0_23, %c0_24] : memref<1x32xf32, #tpu.memory_space<vmem>>, vector<1x32xf32>
      %34 = vector.broadcast %33 : vector<1x32xf32> to vector<8x32xf32>
      %35 = arith.addf %32, %34 : vector<8x32xf32>
      %c0_25 = arith.constant 0 : index
      %c0_26 = arith.constant 0 : index
      %36 = vector.load %arg5[%c0_25, %c0_26] : memref<1x32xf32, #tpu.memory_space<vmem>>, vector<1x32xf32>
      %c0_27 = arith.constant 0 : index
      %c0_28 = arith.constant 0 : index
      %37 = vector.load %arg6[%c0_27, %c0_28] : memref<1x32xf32, #tpu.memory_space<vmem>>, vector<1x32xf32>
      %cst_29 = arith.constant dense<0.000000e+00> : vector<8xf32>
      %38 = vector.multi_reduction <add>, %35, %cst_29 [1] : vector<8x32xf32> to vector<8xf32>
      %39 = vector.shape_cast %38 : vector<8xf32> to vector<8x1xf32>
      %cst_30 = arith.constant 3.200000e+01 : f32
      %40 = vector.broadcast %cst_30 : f32 to vector<8x1xf32>
      %41 = arith.divf %39, %40 : vector<8x1xf32>
      %42 = vector.broadcast %41 : vector<8x1xf32> to vector<8x32xf32>
      %43 = arith.subf %35, %42 : vector<8x32xf32>
      %44 = vector.broadcast %41 : vector<8x1xf32> to vector<8x32xf32>
      %45 = arith.subf %35, %44 : vector<8x32xf32>
      %46 = arith.mulf %43, %45 : vector<8x32xf32>
      %cst_31 = arith.constant dense<0.000000e+00> : vector<8xf32>
      %47 = vector.multi_reduction <add>, %46, %cst_31 [1] : vector<8x32xf32> to vector<8xf32>
      %48 = vector.shape_cast %47 : vector<8xf32> to vector<8x1xf32>
      %cst_32 = arith.constant 3.200000e+01 : f32
      %49 = vector.broadcast %cst_32 : f32 to vector<8x1xf32>
      %50 = arith.divf %48, %49 : vector<8x1xf32>
      %51 = vector.broadcast %41 : vector<8x1xf32> to vector<8x32xf32>
      %52 = arith.subf %35, %51 : vector<8x32xf32>
      %cst_33 = arith.constant 9.99999974E-6 : f32
      %53 = vector.broadcast %cst_33 : f32 to vector<8x1xf32>
      %54 = arith.addf %50, %53 : vector<8x1xf32>
      %55 = math.rsqrt %54 : vector<8x1xf32>
      %56 = vector.broadcast %55 : vector<8x1xf32> to vector<8x32xf32>
      %57 = arith.mulf %52, %56 : vector<8x32xf32>
      %58 = vector.broadcast %36 : vector<1x32xf32> to vector<8x32xf32>
      %59 = arith.mulf %57, %58 : vector<8x32xf32>
      %60 = vector.broadcast %37 : vector<1x32xf32> to vector<8x32xf32>
      %61 = arith.addf %59, %60 : vector<8x32xf32>
      %cst_34 = arith.constant 0.000000e+00 : f32
      %62 = vector.broadcast %cst_34 : f32 to vector<8x32xf32>
      %63 = arith.cmpf ogt, %61, %62 : vector<8x32xf32>
      %cst_35 = arith.constant 0.00999999977 : f32
      %64 = vector.broadcast %cst_35 : f32 to vector<8x32xf32>
      %65 = arith.mulf %64, %61 : vector<8x32xf32>
      %66 = arith.select %63, %61, %65 : vector<8x32xi1>, vector<8x32xf32>
      %c0_36 = arith.constant 0 : index
      %c0_37 = arith.constant 0 : index
      %67 = vector.load %arg7[%c0_36, %c0_37] : memref<32x32xf32, #tpu.memory_space<vmem>>, vector<32x32xf32>
      %cst_38 = arith.constant dense<0.000000e+00> : vector<8x32xf32>
      %68 = tpu.matmul %66, %67, %cst_38 {dimension_numbers = #tpu.dot_dimension_numbers<[1], [0], [0], [1], [0, 0, 1, 1], [], []>} : vector<8x32xf32>, vector<32x32xf32>, vector<8x32xf32> -> vector<8x32xf32>
      %c0_39 = arith.constant 0 : index
      %c0_40 = arith.constant 0 : index
      %69 = vector.load %arg8[%c0_39, %c0_40] : memref<1x32xf32, #tpu.memory_space<vmem>>, vector<1x32xf32>
      %70 = vector.broadcast %69 : vector<1x32xf32> to vector<8x32xf32>
      %71 = arith.addf %68, %70 : vector<8x32xf32>
      %c0_41 = arith.constant 0 : index
      %c0_42 = arith.constant 0 : index
      %72 = vector.load %arg9[%c0_41, %c0_42] : memref<1x32xf32, #tpu.memory_space<vmem>>, vector<1x32xf32>
      %c0_43 = arith.constant 0 : index
      %c0_44 = arith.constant 0 : index
      %73 = vector.load %arg10[%c0_43, %c0_44] : memref<1x32xf32, #tpu.memory_space<vmem>>, vector<1x32xf32>
      %cst_45 = arith.constant dense<0.000000e+00> : vector<8xf32>
      %74 = vector.multi_reduction <add>, %71, %cst_45 [1] : vector<8x32xf32> to vector<8xf32>
      %75 = vector.shape_cast %74 : vector<8xf32> to vector<8x1xf32>
      %cst_46 = arith.constant 3.200000e+01 : f32
      %76 = vector.broadcast %cst_46 : f32 to vector<8x1xf32>
      %77 = arith.divf %75, %76 : vector<8x1xf32>
      %78 = vector.broadcast %77 : vector<8x1xf32> to vector<8x32xf32>
      %79 = arith.subf %71, %78 : vector<8x32xf32>
      %80 = vector.broadcast %77 : vector<8x1xf32> to vector<8x32xf32>
      %81 = arith.subf %71, %80 : vector<8x32xf32>
      %82 = arith.mulf %79, %81 : vector<8x32xf32>
      %cst_47 = arith.constant dense<0.000000e+00> : vector<8xf32>
      %83 = vector.multi_reduction <add>, %82, %cst_47 [1] : vector<8x32xf32> to vector<8xf32>
      %84 = vector.shape_cast %83 : vector<8xf32> to vector<8x1xf32>
      %cst_48 = arith.constant 3.200000e+01 : f32
      %85 = vector.broadcast %cst_48 : f32 to vector<8x1xf32>
      %86 = arith.divf %84, %85 : vector<8x1xf32>
      %87 = vector.broadcast %77 : vector<8x1xf32> to vector<8x32xf32>
      %88 = arith.subf %71, %87 : vector<8x32xf32>
      %cst_49 = arith.constant 9.99999974E-6 : f32
      %89 = vector.broadcast %cst_49 : f32 to vector<8x1xf32>
      %90 = arith.addf %86, %89 : vector<8x1xf32>
      %91 = math.rsqrt %90 : vector<8x1xf32>
      %92 = vector.broadcast %91 : vector<8x1xf32> to vector<8x32xf32>
      %93 = arith.mulf %88, %92 : vector<8x32xf32>
      %94 = vector.broadcast %72 : vector<1x32xf32> to vector<8x32xf32>
      %95 = arith.mulf %93, %94 : vector<8x32xf32>
      %96 = vector.broadcast %73 : vector<1x32xf32> to vector<8x32xf32>
      %97 = arith.addf %95, %96 : vector<8x32xf32>
      %cst_50 = arith.constant 0.000000e+00 : f32
      %98 = vector.broadcast %cst_50 : f32 to vector<8x32xf32>
      %99 = arith.cmpf ogt, %97, %98 : vector<8x32xf32>
      %cst_51 = arith.constant 0.00999999977 : f32
      %100 = vector.broadcast %cst_51 : f32 to vector<8x32xf32>
      %101 = arith.mulf %100, %97 : vector<8x32xf32>
      %102 = arith.select %99, %97, %101 : vector<8x32xi1>, vector<8x32xf32>
      %c0_52 = arith.constant 0 : index
      %c0_53 = arith.constant 0 : index
      %103 = vector.load %arg11[%c0_52, %c0_53] : memref<1x32xf32, #tpu.memory_space<vmem>>, vector<1x32xf32>
      %104 = vector.broadcast %103 : vector<1x32xf32> to vector<8x32xf32>
      %105 = arith.mulf %102, %104 : vector<8x32xf32>
      %cst_54 = arith.constant dense<0.000000e+00> : vector<8xf32>
      %106 = vector.multi_reduction <add>, %105, %cst_54 [1] : vector<8x32xf32> to vector<8xf32>
      %107 = vector.shape_cast %106 : vector<8xf32> to vector<8x1xf32>
      %c0_55 = arith.constant 0 : index
      %c0_56 = arith.constant 0 : index
      %108 = vector.load %arg12[%c0_55, %c0_56] : memref<1x1xf32, #tpu.memory_space<vmem>>, vector<1x1xf32>
      %109 = vector.broadcast %108 : vector<1x1xf32> to vector<8x1xf32>
      %110 = arith.addf %107, %109 : vector<8x1xf32>
      %111 = vector.shape_cast %110 : vector<8x1xf32> to vector<8x1xf32>
      %112 = vector.broadcast %111 : vector<8x1xf32> to vector<8x128xf32>
      %c0_57 = arith.constant 0 : index
      %c0_58 = arith.constant 0 : index
      %113 = vector.load %arg13[%c0_57, %c0_58] : memref<8x128xf32, #tpu.memory_space<vmem>>, vector<8x128xf32>
      tpu.vector_store %arg13[%c0_57, %c0_58], %112 {strides = array<i32>} : memref<8x128xf32, #tpu.memory_space<vmem>>, vector<8x128xf32>,
    } else {
    }
    return
  }
  func.func @transform_0(%arg0: i32) -> (i32, i32) {
    %c0_i32 = arith.constant 0 : i32
    %c0_i32_0 = arith.constant 0 : i32
    return %c0_i32, %arg0 : i32, i32
  }
  func.func @transform_1(%arg0: i32) -> (i32, i32) {
    %c0_i32 = arith.constant 0 : i32
    %c0_i32_0 = arith.constant 0 : i32
    return %arg0, %c0_i32 : i32, i32
  }
  func.func @transform_2(%arg0: i32) -> (i32, i32) {
    %c0_i32 = arith.constant 0 : i32
    %c0_i32_0 = arith.constant 0 : i32
    %c0_i32_1 = arith.constant 0 : i32
    return %c0_i32, %c0_i32_0 : i32, i32
  }
  func.func @transform_3(%arg0: i32) -> (i32, i32) {
    %c0_i32 = arith.constant 0 : i32
    %c0_i32_0 = arith.constant 0 : i32
    %c0_i32_1 = arith.constant 0 : i32
    return %c0_i32, %c0_i32_0 : i32, i32
  }
  func.func @transform_4(%arg0: i32) -> (i32, i32) {
    %c0_i32 = arith.constant 0 : i32
    %c0_i32_0 = arith.constant 0 : i32
    %c0_i32_1 = arith.constant 0 : i32
    return %c0_i32, %c0_i32_0 : i32, i32
  }
  func.func @transform_5(%arg0: i32) -> (i32, i32) {
    %c0_i32 = arith.constant 0 : i32
    %c0_i32_0 = arith.constant 0 : i32
    %c0_i32_1 = arith.constant 0 : i32
    return %c0_i32, %c0_i32_0 : i32, i32
  }
  func.func @transform_6(%arg0: i32) -> (i32, i32) {
    %c0_i32 = arith.constant 0 : i32
    %c0_i32_0 = arith.constant 0 : i32
    %c0_i32_1 = arith.constant 0 : i32
    return %c0_i32, %c0_i32_0 : i32, i32
  }
  func.func @transform_7(%arg0: i32) -> (i32, i32) {
    %c0_i32 = arith.constant 0 : i32
    %c0_i32_0 = arith.constant 0 : i32
    %c0_i32_1 = arith.constant 0 : i32
    return %c0_i32, %c0_i32_0 : i32, i32
  }
  func.func @transform_8(%arg0: i32) -> (i32, i32) {
    %c0_i32 = arith.constant 0 : i32
    %c0_i32_0 = arith.constant 0 : i32
    %c0_i32_1 = arith.constant 0 : i32
    return %c0_i32, %c0_i32_0 : i32, i32
  }
  func.func @transform_9(%arg0: i32) -> (i32, i32) {
    %c0_i32 = arith.constant 0 : i32
    %c0_i32_0 = arith.constant 0 : i32
    %c0_i32_1 = arith.constant 0 : i32
    return %c0_i32, %c0_i32_0 : i32, i32
  }
  func.func @transform_10(%arg0: i32) -> (i32, i32) {
    %c0_i32 = arith.constant 0 : i32
    %c0_i32_0 = arith.constant 0 : i32
    %c0_i32_1 = arith.constant 0 : i32
    return %c0_i32, %c0_i32_0 : i32, i32
  }
  func.func @transform_11(%arg0: i32) -> (i32, i32) {
    %c0_i32 = arith.constant 0 : i32
    %c0_i32_0 = arith.constant 0 : i32
    %c0_i32_1 = arith.constant 0 : i32
    return %c0_i32, %c0_i32_0 : i32, i32
  }
  func.func @transform_12(%arg0: i32) -> (i32, i32) {
    %c0_i32 = arith.constant 0 : i32
    %c0_i32_0 = arith.constant 0 : i32
    %c0_i32_1 = arith.constant 0 : i32
    return %c0_i32, %c0_i32_0 : i32, i32
  }
}

</mosaic_0001>

<bundles_post_ra>
// kernel: tpu_custom_call.1
= control target key start
LH: loop header
LB: loop body
LE: loop exit
PB: predicated region body
PF: predicated region fallthrough
CT: control target
= control target key end

     0   :  { %s1869_s0 = inlined_call_operand.vmem [shape: s32[1,1024], index: 0, kind: input, shape index: {}]   ;;  %s1870_s1 = inlined_call_operand.vmem [shape: f32[1024,32], index: 1, kind: input, shape index: {}]   ;;  %s1871_s2 = inlined_call_operand.vmem [shape: f32[64,32], index: 2, kind: input, shape index: {}]   ;;  %s1872_s3 = inlined_call_operand.vmem [shape: f32[1,32], index: 3, kind: input, shape index: {}]   ;;  %s1873_s4 = inlined_call_operand.vmem [shape: f32[1,32], index: 4, kind: input, shape index: {}]   ;;  %s1874_s5 = inlined_call_operand.vmem [shape: f32[1,32], index: 5, kind: input, shape index: {}]   ;;  %s1875_s6 = inlined_call_operand.vmem [shape: f32[32,32], index: 6, kind: input, shape index: {}]   ;;  %s1876_s7 = inlined_call_operand.vmem [shape: f32[1,32], index: 7, kind: input, shape index: {}]   ;;  %s1877_s8 = inlined_call_operand.vmem [shape: f32[1,32], index: 8, kind: input, shape index: {}]   ;;  %s1878_s9 = inlined_call_operand.vmem [shape: f32[1,32], index: 9, kind: input, shape index: {}]   ;;  %s1879_s10 = inlined_call_operand.vmem [shape: f32[1,32], index: 10, kind: input, shape index: {}]   ;;  %s1880_s11 = inlined_call_operand.<no memory space> [shape: f32[1,1], index: 11, kind: input, shape index: {}]   ;;  %s1881_s12 = inlined_call_operand.hbm [shape: f32[8,128], index: 12, kind: output, shape index: {}]  }
   0x1   :  { %v17_v0 = vstv %s1880_s11 }
   0x2   :  { %18 = vst [vmem:[#allocation4] sm:$0x1] %v17_v0 }
   0x3   :  { %v127_v1 = vld [vmem:[%s1870_s1 + $0x80] sm:$0xff]  ;;  %v128_v2 = vld [vmem:[%s1870_s1 + $0x88] sm:$0xff]  ;;  %v129_v12 = vld [vmem:[%s1870_s1 + $0x90] sm:$0xff]  ;;  %v52_v22 = vlaneseq }
   0x4   :  { %v159_v3 = vld [vmem:[%s1870_s1 + $0x180] sm:$0xff]  ;;  %v1039_v4 = vpack.c.bf16 %v128_v2, %v127_v1  ;;  %v160_v5 = vld [vmem:[%s1870_s1 + $0x188] sm:$0xff]  ;;  %v130_v14 = vld [vmem:[%s1870_s1 + $0x98] sm:$0xff] }
   0x5   :  { %v111_v6 = vld [vmem:[%s1870_s1] sm:$0xff]  ;;  %v112_v7 = vld [vmem:[%s1870_s1 + $0x8] sm:$0xff]  ;;  %v1071_v8 = vpack.c.bf16 %v160_v5, %v159_v3  ;;  %v161_v15 = vld [vmem:[%s1870_s1 + $0x190] sm:$0xff]  ;;  %v1043_v17 = vpack.c.bf16 %v130_v14, %v129_v12  ;;  %v1380_v40 = vshrl.u32 %v52_v22, 7 }
   0x6   :  { %v1041_v9 = vpack.c.bf16 %v112_v7, %v111_v6  ;;  %v143_v10 = vld [vmem:[%s1870_s1 + $0x100] sm:$0xff]  ;;  %v144_v11 = vld [vmem:[%s1870_s1 + $0x108] sm:$0xff]  ;;  %1040 = vmatprep.subr.bf16.mxu0 %v1039_v4  ;;  %v162_v16 = vld [vmem:[%s1870_s1 + $0x198] sm:$0xff] }
   0x7   :  { %v1073_v13 = vpack.c.bf16 %v144_v11, %v143_v10  ;;  %1072 = vmatprep.subr.bf16.mxu1 %v1071_v8  ;;  %v1075_v18 = vpack.c.bf16 %v162_v16, %v161_v15  ;;  %v113_v19 = vld [vmem:[%s1870_s1 + $0x10] sm:$0xff]  ;;  %v114_v20 = vld [vmem:[%s1870_s1 + $0x18] sm:$0xff]  ;;  %v131_v25 = vld [vmem:[%s1870_s1 + $0xa0] sm:$0xff]  ;;  %v56_v57 = vsub.s32 0, %v1380_v40  ;;  %v60_v63 = vsub.s32 1, %v1380_v40 }
   0x8   :  { %1042 = vmatpush3.bf16.msra.mxu0 %v1041_v9  ;;  %v145_v21 = vld [vmem:[%s1870_s1 + $0x110] sm:$0xff]  ;;  %v1045_v23 = vpack.c.bf16 %v114_v20, %v113_v19  ;;  %v146_v24 = vld [vmem:[%s1870_s1 + $0x118] sm:$0xff]  ;;  %v132_v26 = vld [vmem:[%s1870_s1 + $0xa8] sm:$0xff]  ;;  %v64_v0 = vsub.s32 2, %v1380_v40  ;;  %v68_v2 = vsub.s32 3, %v1380_v40  ;;  %v72_v5 = vsub.s32 4, %v1380_v40 }
   0x9   :  { %1074 = vmatpush3.bf16.msra.mxu1 %v1073_v13  ;;  %1044 = vmatprep.subr.bf16.mxu0 %v1043_v17  ;;  %v1077_v27 = vpack.c.bf16 %v146_v24, %v145_v21  ;;  %v1047_v28 = vpack.c.bf16 %v132_v26, %v131_v25  ;;  %v163_v29 = vld [vmem:[%s1870_s1 + $0x1a0] sm:$0xff]  ;;  %v164_v30 = vld [vmem:[%s1870_s1 + $0x1a8] sm:$0xff]  ;;  %v133_v37 = vld [vmem:[%s1870_s1 + $0xb0] sm:$0xff]  ;;  %v76_v10 = vsub.s32 5, %v1380_v40  ;;  %v80_v20 = vsub.s32 6, %v1380_v40 }
   0xa   :  { %1076 = vmatprep.subr.bf16.mxu1 %v1075_v18  ;;  %v115_v31 = vld [vmem:[%s1870_s1 + $0x20] sm:$0xff]  ;;  %v1079_v32 = vpack.c.bf16 %v164_v30, %v163_v29  ;;  %v116_v33 = vld [vmem:[%s1870_s1 + $0x28] sm:$0xff]  ;;  %v134_v38 = vld [vmem:[%s1870_s1 + $0xb8] sm:$0xff]  ;;  %v84_v25 = vsub.s32 7, %v1380_v40  ;;  %v1224_v30 = vmov 0.0  }
   0xb   :  { %v147_v34 = vld [vmem:[%s1870_s1 + $0x120] sm:$0xff]  ;;  %v148_v35 = vld [vmem:[%s1870_s1 + $0x128] sm:$0xff]  ;;  %v1049_v36 = vpack.c.bf16 %v116_v33, %v115_v31  ;;  %v165_v39 = vld [vmem:[%s1870_s1 + $0x1b0] sm:$0xff]  ;;  %v1051_v42 = vpack.c.bf16 %v134_v38, %v133_v37 }
   0xc   :  { %1046 = vmatpush3.bf16.msra.mxu0 %v1045_v23  ;;  %v1081_v41 = vpack.c.bf16 %v148_v35, %v147_v34  ;;  %v166_v43 = vld [vmem:[%s1870_s1 + $0x1b8] sm:$0xff]  ;;  %v117_v44 = vld [vmem:[%s1870_s1 + $0x30] sm:$0xff]  ;;  %v135_v49 = vld [vmem:[%s1870_s1 + $0xc0] sm:$0xff] }
   0xd   :  { %1078 = vmatpush3.bf16.msra.mxu1 %v1077_v27  ;;  %1048 = vmatprep.subr.bf16.mxu0 %v1047_v28  ;;  %v118_v45 = vld [vmem:[%s1870_s1 + $0x38] sm:$0xff]  ;;  %v1083_v46 = vpack.c.bf16 %v166_v43, %v165_v39  ;;  %v149_v47 = vld [vmem:[%s1870_s1 + $0x130] sm:$0xff]  ;;  %v136_v50 = vld [vmem:[%s1870_s1 + $0xc8] sm:$0xff] }
   0xe   :  { %1080 = vmatprep.subr.bf16.mxu1 %v1079_v32  ;;  %v150_v48 = vld [vmem:[%s1870_s1 + $0x138] sm:$0xff]  ;;  %v167_v51 = vld [vmem:[%s1870_s1 + $0x1c0] sm:$0xff]  ;;  %v168_v52 = vld [vmem:[%s1870_s1 + $0x1c8] sm:$0xff]  ;;  %v1053_v53 = vpack.c.bf16 %v118_v45, %v117_v44  ;;  %v1055_v59 = vpack.c.bf16 %v136_v50, %v135_v49 }
   0xf   :  { %v119_v54 = vld [vmem:[%s1870_s1 + $0x40] sm:$0xff]  ;;  %v120_v55 = vld [vmem:[%s1870_s1 + $0x48] sm:$0xff]  ;;  %v1085_v58 = vpack.c.bf16 %v150_v48, %v149_v47  ;;  %v137_v61 = vld [vmem:[%s1870_s1 + $0xd0] sm:$0xff]  ;;  %v1087_v1 = vpack.c.bf16 %v168_v52, %v167_v51 }
  0x10   :  { %1050 = vmatpush3.bf16.msra.mxu0 %v1049_v36  ;;  %v151_v56 = vld [vmem:[%s1870_s1 + $0x140] sm:$0xff]  ;;  %v152_v60 = vld [vmem:[%s1870_s1 + $0x148] sm:$0xff]  ;;  %v138_v62 = vld [vmem:[%s1870_s1 + $0xd8] sm:$0xff]  ;;  %v1057_v6 = vpack.c.bf16 %v120_v55, %v119_v54 }
  0x11   :  { %1082 = vmatpush3.bf16.msra.mxu1 %v1081_v41  ;;  %1052 = vmatprep.subr.bf16.mxu0 %v1051_v42  ;;  %v169_v3 = vld [vmem:[%s1870_s1 + $0x1d0] sm:$0xff]  ;;  %v170_v4 = vld [vmem:[%s1870_s1 + $0x1d8] sm:$0xff]  ;;  %v1089_v7 = vpack.c.bf16 %v152_v60, %v151_v56  ;;  %v1059_v8 = vpack.c.bf16 %v138_v62, %v137_v61  ;;  %v51_v9 = vld [vmem:[%s1869_s0] sm:$0xff]  ;;  %v1225_v42 = vmov 1.0  }
  0x12   :  { %1084 = vmatprep.subr.bf16.mxu1 %v1083_v46  ;;  %v121_v11 = vld [vmem:[%s1870_s1 + $0x50] sm:$0xff]  ;;  %v122_v12 = vld [vmem:[%s1870_s1 + $0x58] sm:$0xff]  ;;  %v1448_v13 = vrot.slane %v51_v9, %v56_v57  ;;  %v61_v14 = vrot.slane %v51_v9, %v60_v63  ;;  %v1450_v15 = vrot.slane %v51_v9, %v64_v0  ;;  %v1091_v16 = vpack.c.bf16 %v170_v4, %v169_v3  ;;  %v139_v22 = vld [vmem:[%s1870_s1 + $0xe0] sm:$0xff] }
  0x13   :  { %v153_v17 = vld [vmem:[%s1870_s1 + $0x150] sm:$0xff]  ;;  %v154_v18 = vld [vmem:[%s1870_s1 + $0x158] sm:$0xff]  ;;  %v69_v19 = vrot.slane %v51_v9, %v68_v2  ;;  %v1459_v21 = vrot.slane %v51_v9, %v72_v5  ;;  %v1061_v23 = vpack.c.bf16 %v122_v12, %v121_v11  ;;  %v1469_v24 = vrot.slane %v51_v9, %v76_v10  ;;  %v140_v26 = vld [vmem:[%s1870_s1 + $0xe8] sm:$0xff] }
  0x14   :  { %1054 = vmatpush3.bf16.msra.mxu0 %v1053_v53  ;;  %vm86_vm0 = vcmp.eq.s32.totalorder %v1380_v40, %v1448_v13  ;;  %vm87_vm1 = vcmp.eq.s32.totalorder %v1380_v40, %v61_v14  ;;  %vm88_vm2 = vcmp.eq.s32.totalorder %v1380_v40, %v1450_v15  ;;  %v171_v27 = vld [vmem:[%s1870_s1 + $0x1e0] sm:$0xff]  ;;  %v172_v28 = vld [vmem:[%s1870_s1 + $0x1e8] sm:$0xff]  ;;  %v1093_v29 = vpack.c.bf16 %v154_v18, %v153_v17  ;;  %v141_v39 = vld [vmem:[%s1870_s1 + $0xf0] sm:$0xff] }
  0x15   :  { %1086 = vmatpush3.bf16.msra.mxu1 %v1085_v58  ;;  %1056 = vmatprep.subr.bf16.mxu0 %v1055_v59  ;;  %vm89_vm3 = vcmp.eq.s32.totalorder %v1380_v40, %v69_v19  ;;  %v829_v31 = vsel %vm86_vm0, 1.0, %v1224_v30  ;;  %v830_v32 = vsel %vm87_vm1, 1.0, %v1224_v30  ;;  %v123_v33 = vld [vmem:[%s1870_s1 + $0x60] sm:$0xff]  ;;  %v124_v34 = vld [vmem:[%s1870_s1 + $0x68] sm:$0xff]  ;;  %v1498_v36 = vrot.slane %v51_v9, %v80_v20  ;;  %v142_v41 = vld [vmem:[%s1870_s1 + $0xf8] sm:$0xff] }
  0x16   :  { %1088 = vmatprep.subr.bf16.mxu1 %v1087_v1  ;;  %v155_v35 = vld [vmem:[%s1870_s1 + $0x160] sm:$0xff]  ;;  %v831_v37 = vsel %vm88_vm2, 1.0, %v1224_v30  ;;  %v156_v38 = vld [vmem:[%s1870_s1 + $0x168] sm:$0xff]  ;;  %837 = vmatprep.mubr.msk.f32.mxu0 %vm87_vm1, %v1225_v42  ;;  %vm90_vm4 = vcmp.eq.s32.totalorder %v1380_v40, %v1459_v21  ;;  %v523_v43 = vadd.f32 %v830_v32, %v829_v31  ;;  %v1063_v44 = vpack.c.bf16 %v140_v26, %v139_v22  ;;  %v173_v46 = vld [vmem:[%s1870_s1 + $0x1f0] sm:$0xff] }
  0x17   :  { %v1095_v45 = vpack.c.bf16 %v172_v28, %v171_v27  ;;  %v174_v47 = vld [vmem:[%s1870_s1 + $0x1f8] sm:$0xff]  ;;  %839 = vmatprep.mubr.msk.f32.mxu1 %vm89_vm3, %v1225_v42  ;;  %v1527_v48 = vrot.slane %v51_v9, %v84_v25  ;;  %vm91_vm5 = vcmp.eq.s32.totalorder %v1380_v40, %v1469_v24  ;;  %v832_v49 = vsel %vm89_vm3, 1.0, %v1224_v30  ;;  %v125_v54 = vld [vmem:[%s1870_s1 + $0x70] sm:$0xff]  ;;  %v191_v60 = vld [vmem:[%s1870_s1 + $0x280] sm:$0xff] }
  0x18   :  { %1058 = vmatpush3.bf16.msra.mxu0 %v1057_v6  ;;  %v1065_v50 = vpack.c.bf16 %v124_v34, %v123_v33  ;;  %v524_v51 = vadd.f32 %v831_v37, %v523_v43  ;;  %v1097_v52 = vpack.c.bf16 %v156_v38, %v155_v35  ;;  %v1067_v53 = vpack.c.bf16 %v142_v41, %v141_v39  ;;  %v126_v55 = vld [vmem:[%s1870_s1 + $0x78] sm:$0xff]  ;;  %v157_v56 = vld [vmem:[%s1870_s1 + $0x170] sm:$0xff]  ;;  %v192_v61 = vld [vmem:[%s1870_s1 + $0x288] sm:$0xff] }
  0x19   :  { %1090 = vmatpush3.bf16.msra.mxu1 %v1089_v7  ;;  %1060 = vmatprep.subr.bf16.mxu0 %v1059_v8  ;;  %v833_v57 = vsel %vm90_vm4, 1.0, %v1224_v30  ;;  %v1099_v58 = vpack.c.bf16 %v174_v47, %v173_v46  ;;  %v158_v59 = vld [vmem:[%s1870_s1 + $0x178] sm:$0xff]  ;;  %vm92_vm6 = vcmp.eq.s32.totalorder %v1380_v40, %v1498_v36  ;;  %v223_v63 = vld [vmem:[%s1870_s1 + $0x380] sm:$0xff]  ;;  %v224_v0 = vld [vmem:[%s1870_s1 + $0x388] sm:$0xff]  ;;  %vm93_vm7 = vcmp.eq.s32.totalorder %v1380_v40, %v1527_v48 }
  0x1a   :  { %1092 = vmatprep.subr.bf16.mxu1 %v1091_v16  ;;  %v525_v62 = vadd.f32 %v832_v49, %v524_v51  ;;  %v834_v1 = vsel %vm91_vm5, 1.0, %v1224_v30  ;;  %v1069_v2 = vpack.c.bf16 %v126_v55, %v125_v54  ;;  %v1101_v4 = vpack.c.bf16 %v158_v59, %v157_v56  ;;  %v175_v6 = vld [vmem:[%s1870_s1 + $0x200] sm:$0xff]  ;;  %v176_v7 = vld [vmem:[%s1870_s1 + $0x208] sm:$0xff]  ;;  %v193_v12 = vld [vmem:[%s1870_s1 + $0x290] sm:$0xff] }
  0x1b   :  { %v1103_v5 = vpack.c.bf16 %v192_v61, %v191_v60  ;;  %v835_v8 = vsel %vm92_vm6, 1.0, %v1224_v30  ;;  %v1135_v9 = vpack.c.bf16 %v224_v0, %v223_v63  ;;  %v207_v10 = vld [vmem:[%s1870_s1 + $0x300] sm:$0xff]  ;;  %v208_v11 = vld [vmem:[%s1870_s1 + $0x308] sm:$0xff]  ;;  %v194_v16 = vld [vmem:[%s1870_s1 + $0x298] sm:$0xff]  ;;  %v836_v19 = vsel %vm93_vm7, 1.0, %v1224_v30 }
  0x1c   :  { %1062 = vmatpush3.bf16.msra.mxu0 %v1061_v23  ;;  %v526_v3 = vadd.f32 %v833_v57, %v525_v62  ;;  %v225_v17 = vld [vmem:[%s1870_s1 + $0x390] sm:$0xff]  ;;  %v226_v18 = vld [vmem:[%s1870_s1 + $0x398] sm:$0xff]  ;;  %v1105_v20 = vpack.c.bf16 %v176_v7, %v175_v6  ;;  %v1137_v23 = vpack.c.bf16 %v208_v11, %v207_v10  ;;  %v1107_v28 = vpack.c.bf16 %v194_v16, %v193_v12  ;;  %v195_v32 = vld [vmem:[%s1870_s1 + $0x2a0] sm:$0xff] }
  0x1d   :  { %1094 = vmatpush3.bf16.msra.mxu1 %v1093_v29  ;;  %1064 = vmatprep.subr.bf16.mxu0 %v1063_v44  ;;  %v177_v25 = vld [vmem:[%s1870_s1 + $0x210] sm:$0xff]  ;;  %v178_v26 = vld [vmem:[%s1870_s1 + $0x218] sm:$0xff]  ;;  %v1139_v29 = vpack.c.bf16 %v226_v18, %v225_v17  ;;  %v196_v33 = vld [vmem:[%s1870_s1 + $0x2a8] sm:$0xff] }
  0x1e   :  { %1096 = vmatprep.subr.bf16.mxu1 %v1095_v45  ;;  %v527_v14 = vadd.f32 %v834_v1, %v526_v3  ;;  %v209_v27 = vld [vmem:[%s1870_s1 + $0x310] sm:$0xff]  ;;  %v210_v31 = vld [vmem:[%s1870_s1 + $0x318] sm:$0xff]  ;;  %v227_v35 = vld [vmem:[%s1870_s1 + $0x3a0] sm:$0xff]  ;;  %v1109_v38 = vpack.c.bf16 %v178_v26, %v177_v25  ;;  %v1111_v13 = vpack.c.bf16 %v196_v33, %v195_v32 }
  0x1f   :  { %v228_v37 = vld [vmem:[%s1870_s1 + $0x3a8] sm:$0xff]  ;;  %v1141_v39 = vpack.c.bf16 %v210_v31, %v209_v27  ;;  %v179_v41 = vld [vmem:[%s1870_s1 + $0x220] sm:$0xff]  ;;  %v197_v46 = vld [vmem:[%s1870_s1 + $0x2b0] sm:$0xff] }
  0x20   :  { %1066 = vmatpush3.bf16.msra.mxu0 %v1065_v50  ;;  %v528_v22 = vadd.f32 %v835_v8, %v527_v14  ;;  %v180_v43 = vld [vmem:[%s1870_s1 + $0x228] sm:$0xff]  ;;  %v211_v44 = vld [vmem:[%s1870_s1 + $0x320] sm:$0xff]  ;;  %v1143_v15 = vpack.c.bf16 %v228_v37, %v227_v35  ;;  %v198_v47 = vld [vmem:[%s1870_s1 + $0x2b8] sm:$0xff] }
  0x21   :  { %1098 = vmatpush3.bf16.msra.mxu1 %v1097_v52  ;;  %1068 = vmatprep.subr.bf16.mxu0 %v1067_v53  ;;  %v212_v45 = vld [vmem:[%s1870_s1 + $0x328] sm:$0xff]  ;;  %v229_v49 = vld [vmem:[%s1870_s1 + $0x3b0] sm:$0xff]  ;;  %v230_v50 = vld [vmem:[%s1870_s1 + $0x3b8] sm:$0xff]  ;;  %v1113_v51 = vpack.c.bf16 %v180_v43, %v179_v41  ;;  %v1115_v53 = vpack.c.bf16 %v198_v47, %v197_v46 }
  0x22   :  { %1100 = vmatprep.subr.bf16.mxu1 %v1099_v58  ;;  %v529_v34 = vadd.f32 %v836_v19, %v528_v22  ;;  %v1145_v52 = vpack.c.bf16 %v212_v45, %v211_v44  ;;  %v181_v54 = vld [vmem:[%s1870_s1 + $0x230] sm:$0xff]  ;;  %v182_v24 = vld [vmem:[%s1870_s1 + $0x238] sm:$0xff]  ;;  %v1147_v48 = vpack.c.bf16 %v230_v50, %v229_v49  ;;  %v199_v57 = vld [vmem:[%s1870_s1 + $0x2c0] sm:$0xff] }
  0x23   :  { %v213_v55 = vld [vmem:[%s1870_s1 + $0x330] sm:$0xff]  ;;  %v214_v56 = vld [vmem:[%s1870_s1 + $0x338] sm:$0xff]  ;;  %v200_v58 = vld [vmem:[%s1870_s1 + $0x2c8] sm:$0xff] }
  0x24   :  { %1070 = vmatpush3.bf16.msra.mxu0 %v1069_v2  ;;  %530 = vadd.xlane.f32.xlu0 %v529_v34  ;;  %v231_v59 = vld [vmem:[%s1870_s1 + $0x3c0] sm:$0xff]  ;;  %v232_v60 = vld [vmem:[%s1870_s1 + $0x3c8] sm:$0xff] }
  0x25   :  { %1102 = vmatpush3.bf16.msra.mxu1 %v1101_v4  ;;  %1104 = vmatprep.subr.bf16.mxu0 %v1103_v5 }
  0x26   :  { %1136 = vmatprep.subr.bf16.mxu1 %v1135_v9 }
  0x27   :  { %838 = vmatmul.mubr.msk.f32.vlgmr.msra.gmra.mrb[0].mxu0 %vm86_vm0, %v1225_v42 }
  0x28   :  { %840 = vmatmul.mubr.msk.f32.vlgmr.msra.gmra.mrb[0].mxu1 %vm88_vm2, %v1225_v42  ;;  %1106 = vmatpush3.bf16.msra.mxu0 %v1105_v20 }
  0x29   :  { %1138 = vmatpush3.bf16.msra.mxu1 %v1137_v23  ;;  %1108 = vmatprep.subr.bf16.mxu0 %v1107_v28 }
  0x2a   :  { %1140 = vmatprep.subr.bf16.mxu1 %v1139_v29  ;;  %841 = vmatprep.mubr.msk.f32.mxu0 %vm91_vm5, %v1225_v42 }
  0x2b   :  { %843 = vmatprep.mubr.msk.f32.mxu1 %vm93_vm7, %v1225_v42 }
  0x2c   :  { %1110 = vmatpush3.bf16.msra.mxu0 %v1109_v38 }
  0x2d   :  { %1142 = vmatpush3.bf16.msra.mxu1 %v1141_v39  ;;  %1112 = vmatprep.subr.bf16.mxu0 %v1111_v13 }
  0x2e   :  { %1144 = vmatprep.subr.bf16.mxu1 %v1143_v15 }
  0x2f   :  { %19 = vsyncpa [#allocation6], 0  ;;  %v1117_v61 = vpack.c.bf16 %v182_v24, %v181_v54  ;;  %v1149_v62 = vpack.c.bf16 %v214_v56, %v213_v55  ;;  %v1119_v63 = vpack.c.bf16 %v200_v58, %v199_v57  ;;  %v183_v0 = vld [vmem:[%s1870_s1 + $0x240] sm:$0xff]  ;;  %v184_v1 = vld [vmem:[%s1870_s1 + $0x248] sm:$0xff]  ;;  %v1151_v3 = vpack.c.bf16 %v232_v60, %v231_v59 }
  0x30   :  { %1114 = vmatpush3.bf16.msra.mxu0 %v1113_v51  ;;  %v215_v2 = vld [vmem:[%s1870_s1 + $0x340] sm:$0xff]  ;;  %v216_v4 = vld [vmem:[%s1870_s1 + $0x348] sm:$0xff]  ;;  %v201_v5 = vld [vmem:[%s1870_s1 + $0x2d0] sm:$0xff]  ;;  %v1121_v9 = vpack.c.bf16 %v184_v1, %v183_v0  ;;  %v1226_v37 = vmov 0   ;;  %vm48_vm8 = vcmask 261120   ;;  %v1227_v36 = vmov 0.0|0.0  }
  0x31   :  { %1146 = vmatpush3.bf16.msra.mxu1 %v1145_v52  ;;  %1116 = vmatprep.subr.bf16.mxu0 %v1115_v53  ;;  %v202_v6 = vld [vmem:[%s1870_s1 + $0x2d8] sm:$0xff]  ;;  %v233_v7 = vld [vmem:[%s1870_s1 + $0x3d0] sm:$0xff]  ;;  %v1153_v10 = vpack.c.bf16 %v216_v4, %v215_v2  ;;  %v203_v19 = vld [vmem:[%s1870_s1 + $0x2e0] sm:$0xff]  ;;  %49 = vst.msk [vmem:[#allocation2] sm:$0xff] %vm48_vm8, %v1224_v30  ;;  %vm1228_vm9 = vmmov 0   ;;  %vm567_vm10 = vcmask 523264  }
  0x32   :  { %1148 = vmatprep.subr.bf16.mxu1 %v1147_v48  ;;  %v234_v8 = vld [vmem:[%s1870_s1 + $0x3d8] sm:$0xff]  ;;  %v1123_v11 = vpack.c.bf16 %v202_v6, %v201_v5  ;;  %v185_v12 = vld [vmem:[%s1870_s1 + $0x250] sm:$0xff]  ;;  %v204_v20 = vld [vmem:[%s1870_s1 + $0x2e8] sm:$0xff]  ;;  %1192 = vset.pattern.permute.xlu0 %v1226_v37 }
  0x33   :  { %v186_v14 = vld [vmem:[%s1870_s1 + $0x258] sm:$0xff]  ;;  %v217_v16 = vld [vmem:[%s1870_s1 + $0x350] sm:$0xff]  ;;  %v1155_v17 = vpack.c.bf16 %v234_v8, %v233_v7  ;;  %v235_v22 = vld [vmem:[%s1870_s1 + $0x3e0] sm:$0xff]  ;;  %v1127_v27 = vpack.c.bf16 %v204_v20, %v203_v19  ;;  %1193 = vset.pattern.permute.xlu1 %v1226_v37 }
  0x34   :  { %1118 = vmatpush3.bf16.msra.mxu0 %v1117_v61  ;;  %v218_v18 = vld [vmem:[%s1870_s1 + $0x358] sm:$0xff]  ;;  %v236_v23 = vld [vmem:[%s1870_s1 + $0x3e8] sm:$0xff]  ;;  %v1125_v25 = vpack.c.bf16 %v186_v14, %v185_v12  ;;  %v187_v28 = vld [vmem:[%s1870_s1 + $0x260] sm:$0xff] }
  0x35   :  { %1150 = vmatpush3.bf16.msra.mxu1 %v1149_v62  ;;  %1120 = vmatprep.subr.bf16.mxu0 %v1119_v63  ;;  %v1157_v26 = vpack.c.bf16 %v218_v18, %v217_v16  ;;  %v188_v29 = vld [vmem:[%s1870_s1 + $0x268] sm:$0xff]  ;;  %v219_v31 = vld [vmem:[%s1870_s1 + $0x360] sm:$0xff]  ;;  %v1159_v32 = vpack.c.bf16 %v236_v23, %v235_v22  ;;  %v205_v34 = vld [vmem:[%s1870_s1 + $0x2f0] sm:$0xff] }
  0x36   :  { %1152 = vmatprep.subr.bf16.mxu1 %v1151_v3  ;;  %v220_v33 = vld [vmem:[%s1870_s1 + $0x368] sm:$0xff]  ;;  %v206_v35 = vld [vmem:[%s1870_s1 + $0x2f8] sm:$0xff]  ;;  %v237_v38 = vld [vmem:[%s1870_s1 + $0x3f0] sm:$0xff]  ;;  %v1129_v13 = vpack.c.bf16 %v188_v29, %v187_v28 }
  0x37   :  { %v238_v39 = vld [vmem:[%s1870_s1 + $0x3f8] sm:$0xff]  ;;  %v1161_v41 = vpack.c.bf16 %v220_v33, %v219_v31  ;;  %v1131_v43 = vpack.c.bf16 %v206_v35, %v205_v34  ;;  %v189_v44 = vld [vmem:[%s1870_s1 + $0x270] sm:$0xff]  ;;  %v552_v54 = vld [vmem:[%s1871_s2] sm:$0xff] }
  0x38   :  { %1122 = vmatpush3.bf16.msra.mxu0 %v1121_v9  ;;  %v190_v15 = vld [vmem:[%s1870_s1 + $0x278] sm:$0xff]  ;;  %v1163_v45 = vpack.c.bf16 %v238_v39, %v237_v38  ;;  %v221_v46 = vld [vmem:[%s1870_s1 + $0x370] sm:$0xff]  ;;  %v553_v21 = vld [vmem:[%s1871_s2 + $0x8] sm:$0xff] }
  0x39   :  { %1154 = vmatpush3.bf16.msra.mxu1 %v1153_v10  ;;  %1124 = vmatprep.subr.bf16.mxu0 %v1123_v11  ;;  %v222_v47 = vld [vmem:[%s1870_s1 + $0x378] sm:$0xff]  ;;  %v1133_v49 = vpack.c.bf16 %v190_v15, %v189_v44  ;;  %v554_v40 = vld [vmem:[%s1871_s2 + $0x10] sm:$0xff]  ;;  %v556_v48 = vld [vmem:[%s1871_s2 + $0x20] sm:$0xff] }
  0x3a   :  { %1156 = vmatprep.subr.bf16.mxu1 %v1155_v17  ;;  %v1165_v50 = vpack.c.bf16 %v222_v47, %v221_v46  ;;  %v555_v24 = vld [vmem:[%s1871_s2 + $0x18] sm:$0xff]  ;;  %v557_v56 = vld [vmem:[%s1871_s2 + $0x28] sm:$0xff]  ;;  %v558_v58 = vld [vmem:[%s1871_s2 + $0x30] sm:$0xff] }
  0x3b   :  { %v1171_v55 = vpack.c.bf16 %v555_v24, %v554_v40  ;;  %v1174_v57 = vpack.c.bf16 %v557_v56, %v556_v48  ;;  %v559_v59 = vld [vmem:[%s1871_s2 + $0x38] sm:$0xff]  ;;  %v110_v11 = vld [vmem:[#allocation2] sm:$0xff]  ;;  %s1229_s2 = smov 32   ;;  %v675_v34 = vld [vmem:[%s1875_s6 + $0x8] sm:$0xff] }
  0x3c   :  { %1126 = vmatpush3.bf16.msra.mxu0 %v1125_v25  ;;  %v1177_v60 = vpack.c.bf16 %v559_v59, %v558_v58  ;;  %v845_v22 = vld [vmem:[%s1872_s3] ss:$0 sm:$0xff]  ;;  %v676_v35 = vld [vmem:[%s1875_s6 + $0x10] sm:$0xff]  ;;  %v677_v38 = vld [vmem:[%s1875_s6 + $0x18] sm:$0xff] }
  0x3d   :  { %1158 = vmatpush3.bf16.msra.mxu1 %v1157_v26  ;;  %1128 = vmatprep.subr.bf16.mxu0 %v1127_v27  ;;  %v674_v33 = vld [vmem:[%s1875_s6] sm:$0xff]  ;;  %v1183_v39 = vpack.c.bf16 %v677_v38, %v676_v35 }
  0x3e   :  { %1160 = vmatprep.subr.bf16.mxu1 %v1159_v32  ;;  %v1180_v37 = vpack.c.bf16 %v675_v34, %v674_v33  ;;  %v847_v15 = vld [vmem:[%s1873_s4] ss:$0 sm:$0xff] }
  0x3f   :  { %v848_v46 = vld [vmem:[%s1874_s5] ss:$0 sm:$0xff] }
  0x40   :  { %1130 = vmatpush3.bf16.msra.mxu0 %v1129_v13 }
  0x41   :  { %1162 = vmatpush3.bf16.msra.mxu1 %v1161_v41  ;;  %1132 = vmatprep.subr.bf16.mxu0 %v1131_v43 }
  0x42   :  { %1164 = vmatprep.subr.bf16.mxu1 %v1163_v45 }
  0x44   :  { %1134 = vmatpush3.bf16.msra.mxu0 %v1133_v49 }
  0x45   :  { %1166 = vmatpush3.bf16.msra.mxu1 %v1165_v50  ;;  %1167 = vmatprep.subr.bf16.mxu0 %v1227_v36 }
  0x46   :  { %1179 = vmatprep.subr.bf16.mxu1 %v1227_v36 }
  0x47   :  { %842 = vmatmul.mubr.msk.f32.vlgmr.msra.gmra.mrb[2].mxu0 %vm90_vm4, %v1225_v42 }
  0x48   :  { %844 = vmatmul.mubr.msk.f32.vlgmr.msra.gmra.mrb[2].mxu1 %vm92_vm6, %v1225_v42  ;;  %v1168_v42 = vpack.c.bf16 %v553_v21, %v552_v54  ;;  %1025 = vmatprep.mubr.msk.f32.mxu0 %vm1228_vm9, %v1224_v30 }
  0x49   :  { %1036 = vmatprep.mubr.msk.f32.mxu1 %vm1228_vm9, %v1224_v30  ;;  %1181 = vmatpush3.bf16.msra.mxu1 %v1180_v37 }
  0x4a   :  { %1169 = vmatpush3.bf16.msra.mxu0 %v1168_v42  ;;  %1182 = vmatprep.subr.bf16.mxu1 %v1227_v36 }
  0x4b   :  { %1170 = vmatprep.subr.bf16.mxu0 %v1227_v36 }
  0x4d   :  { %1184 = vmatpush3.bf16.msra.mxu1 %v1183_v39 }
  0x4e   :  { %1172 = vmatpush3.bf16.msra.mxu0 %v1171_v55 }
  0x4f   :  { %1173 = vmatprep.subr.bf16.mxu0 %v1227_v36 }
  0x52   :  { %1175 = vmatpush3.bf16.msra.mxu0 %v1174_v57 }
  0x53   :  { %1176 = vmatprep.subr.bf16.mxu0 %v1227_v36 }
  0x56   :  { %1178 = vmatpush3.bf16.msra.mxu0 %v1177_v60  ;;  %v851_v60 = vld [vmem:[%s1877_s8] ss:$0 sm:$0xff]  ;;  %s1230_s8 = smov [#allocation5]  }
  0x57   :  { %s821_s17 = sshll.u32 %s1230_s8, 4  ;;  %s822_s17 = int_to_ptr.vmem [resolvable:$true] %s821_s17 }
  0x58   :  { %p1205_p1 = scmp.lt.s32.totalorder %s822_s17, %s822_s17 }
  0xb1   :  { %v531_v51 = vpop.xlane.xlu0 %530 }
  0xb2   :  { %v539_v52 = vmax.f32 %v531_v51, 1.0 }
  0xb4   :  { %1194 = vrcp.f32 %v539_v52  ;;  %v849_v52 = vld [vmem:[%s1876_s7] ss:$0 sm:$0xff] }
  0xbe   :  { %v1195_v53 = vpop.eup %1194 }
  0xbf   :  { %543 = vperm.xlu0 %1192, %v1195_v53  }
  0xfa   :  { %v887_v61 = vpop.f32.mrb[0].mxu0 }
  0xfb   :  { %v922_v62 = vpop.f32.mrb[0].mxu1  ;;  %v888_v63 = vpop.f32.mrb[1].mxu0 }
  0xfc   :  { %v889_v0 = vadd.f32 %v888_v63, %v887_v61  ;;  %v923_v1 = vpop.f32.mrb[1].mxu1 }
  0xfd   :  { %v924_v2 = vadd.f32 %v923_v1, %v922_v62  ;;  %v852_v62 = vld [vmem:[%s1878_s9] ss:$0 sm:$0xff]  ;;  %s1200_s9 = scalar_lea.vmem %s822_s17, 128 }
  0xfe   :  { %p1201_p0 = scmp.ne.s32.totalorder %s822_s17, %s1200_s9  ;;  %p1206_p2 = scmp.lt.s32.totalorder %s1200_s9, %s1200_s9 }
  0xff   :  { %v376_v3 = vadd.f32 %v924_v2, %v889_v0  ;;  %v853_v2 = vld [vmem:[%s1879_s10] ss:$0 sm:$0xff] }
 0x100   :  { %p1207_p3 = por %p1206_p2, %p1205_p1 }
 0x102   :  { %p1208_p4 = pnand %p1207_p3, %p1201_p0 }
 0x11a   :  { %v957_v4 = vpop.f32.mrb[2].mxu0 }
 0x11b   :  { %v958_v5 = vpop.f32.mrb[3].mxu0  ;;  %v992_v6 = vpop.f32.mrb[2].mxu1 }
 0x11c   :  { %v959_v7 = vadd.f32 %v958_v5, %v957_v4  ;;  %v993_v8 = vpop.f32.mrb[3].mxu1 }
 0x11d   :  { %v994_v9 = vadd.f32 %v993_v8, %v992_v6  ;;  %v854_v6 = vld [vmem:[#allocation4] ss:$0 sm:$0xff] }
 0x11e   :  { %v446_v10 = vadd.f32 %v959_v7, %v376_v3 }
 0x120   :  { %v516_v12 = vadd.f32 %v994_v9, %v446_v10 }
 0x122   :  { %v519_v14 = vadd.f32 %v516_v12, %v110_v11 }
 0x124   :  { %521 = vst.msk [vmem:[#allocation2] sm:$0xff] %vm48_vm8, %v519_v14 }
 0x12b   :  { %v537_v16 = vld [vmem:[#allocation2] sm:$0xff] }
 0x12c   :  { %548 = vrot.lane.b32.xlu1 %v537_v16, %s1229_s2 }
 0x13e   :  { %v544_v17 = vpop.permute.xlu0 %543 }
 0x13f   :  { %v546_v18 = vmul.f32 %v544_v17, %v537_v16 }
 0x19e   :  { %v549_v19 = vpop.permute.xlu1 %548 }
 0x19f   :  { %v551_v20 = vsel %vm48_vm8, %v546_v18, %v549_v19 }
 0x1a0   :  { %1026 = vmatmul.mubr.msk.f32.vlgmr.msra.gmra.mrb[4].mxu0 %vm567_vm10, %v551_v20 }
 0x273   :  { %v637_v23 = vpop.f32.mrb[4].mxu0 }
 0x274   :  { %v638_v25 = vadd.f32 %v845_v22, %v637_v23  ;;  %v1027_v30 = vpop.f32.mrb[5].mxu0 }
 0x276   :  { %v643_v26 = vsel %vm48_vm8, %v638_v25, 0.0 }
 0x277   :  { %644 = vadd.xlane.f32.xlu1 %v643_v26 }
 0x304   :  { %v645_v27 = vpop.xlane.xlu1 %644 }
 0x305   :  { %v647_v28 = vmul.f32 0.03125, %v645_v27 }
 0x307   :  { %v648_v29 = vsub.f32 %v638_v25, %v647_v28 }
 0x309   :  { %v649_v31 = vmul.f32 %v648_v29, %v648_v29 }
 0x30b   :  { %v650_v32 = vsel %vm48_vm8, %v649_v31, 0.0 }
 0x30c   :  { %651 = vadd.xlane.f32.xlu1 %v650_v32 }
 0x399   :  { %v652_v13 = vpop.xlane.xlu1 %651 }
 0x39a   :  { %v653_v41 = vmul.f32 0.03125, %v652_v13 }
 0x39c   :  { %v654_v43 = vadd.f32 1e-05, %v653_v41 }
 0x39e   :  { %1196 = vrsqrt.f32 %v654_v43 }
 0x3a8   :  { %v1197_v44 = vpop.eup %1196 }
 0x3a9   :  { %v656_v45 = vmul.f32 %v1197_v44, %v648_v29 }
 0x3ab   :  { %v663_v47 = vmul.f32 %v847_v15, %v656_v45 }
 0x3ad   :  { %v670_v49 = vadd.f32 %v848_v46, %v663_v47 }
 0x3af   :  { %vm671_vm11 = vcmp.gt.f32.partialorder %v670_v49, 0.0  ;;  %v672_v50 = vmul.f32 0.01, %v670_v49 }
 0x3b1   :  { %v673_v51 = vsel %vm671_vm11, %v670_v49, %v672_v50 }
 0x3b2   :  { %1037 = vmatmul.mubr.msk.f32.vlgmr.msra.gmra.mrb[4].mxu1 %vm48_vm8, %v673_v51 }
 0x485   :  { %v754_v53 = vpop.f32.mrb[4].mxu1 }
 0x486   :  { %v755_v54 = vadd.f32 %v849_v52, %v754_v53  ;;  %v1038_v21 = vpop.f32.mrb[5].mxu1 }
 0x488   :  { %v760_v40 = vsel %vm48_vm8, %v755_v54, 0.0 }
 0x489   :  { %761 = vadd.xlane.f32.xlu1 %v760_v40 }
 0x516   :  { %v762_v36 = vpop.xlane.xlu1 %761 }
 0x517   :  { %v763_v42 = vmul.f32 0.03125, %v762_v36 }
 0x519   :  { %v764_v24 = vsub.f32 %v755_v54, %v763_v42 }
 0x51b   :  { %v765_v55 = vmul.f32 %v764_v24, %v764_v24 }
 0x51d   :  { %v766_v48 = vsel %vm48_vm8, %v765_v55, 0.0 }
 0x51e   :  { %767 = vadd.xlane.f32.xlu0 %v766_v48 }
 0x5ab   :  { %v768_v56 = vpop.xlane.xlu0 %767 }
 0x5ac   :  { %v769_v57 = vmul.f32 0.03125, %v768_v56 }
 0x5ae   :  { %v770_v58 = vadd.f32 1e-05, %v769_v57 }
 0x5b0   :  { %1198 = vrsqrt.f32 %v770_v58 }
 0x5ba   :  { %v1199_v59 = vpop.eup %1198 }
 0x5bb   :  { %v772_v61 = vmul.f32 %v1199_v59, %v764_v24 }
 0x5bd   :  { %v779_v63 = vmul.f32 %v851_v60, %v772_v61 }
 0x5bf   :  { %v786_v0 = vadd.f32 %v852_v62, %v779_v63 }
 0x5c1   :  { %vm787_vm12 = vcmp.gt.f32.partialorder %v786_v0, 0.0  ;;  %v788_v1 = vmul.f32 0.01, %v786_v0 }
 0x5c3   :  { %v789_v3 = vsel %vm787_vm12, %v786_v0, %v788_v1 }
 0x5c4   :  { %v797_v4 = vmul.f32 %v853_v2, %v789_v3 }
 0x5c6   :  { %v798_v5 = vsel %vm48_vm8, %v797_v4, 0.0 }
 0x5c7   :  { %799 = vadd.xlane.f32.xlu1 %v798_v5 }
 0x654   :  { %v800_v7 = vpop.xlane.xlu1 %799 }
 0x655   :  { %v808_v8 = vadd.f32 %v854_v6, %v800_v7 }
 0x657   :  { %811 = vperm.xlu1 %1193, %v808_v8  }
 0x6d6   :  { %v812_v9 = vpop.permute.xlu1 %811 }
 0x6d7   :  { %814 = vst [vmem:[#allocation5] sm:$0xff] %v812_v9 }
 0x6d8   :  { %1211 = shalt.err (!%p1208_p4)
}
 0x6d9   :  { %s1212_s19 = scalar_lea.hbm %s1881_s12, 128 }
 0x6da   :  { %p1213_p5 = scmp.ne.s32.totalorder %s1881_s12, %s1212_s19  ;;  %p1216_p6 = scmp.lt.u32.totalorder %s1212_s19, %s1881_s12 }
 0x6dc   :  { %p1218_p7 = pnand %p1216_p6, %p1213_p5 }
 0x6de   :  { %1221 = shalt.err (!%p1218_p7)
}
 0x6df   :  { %824 = dma.vmem_to_hbm [thread:$0]  %s822_s17, 128, %s1881_s12, [#allocation6]  }
 0x6e0   :  { %1222 = dma.done.wait [#allocation6], 128  }
 0x6e1   :  { %1223 = vsyncadd [#allocation6], 4294967168 }
 0x6e2   :  { %828 = vsyncpa [#allocation6], 1 }

</bundles_post_ra>
